<compile_context>
chip_gen: v7x
topology: tpu7x:2x2x1
jax: 0.10.0
libtpu: 0.0.40
codegen_flags: <defaults>
</compile_context>

<pallas_src>
import math

import jax
import jax.numpy as jnp
from jax.experimental import pallas as pl
from jax.experimental.pallas import tpu as pltpu


# ----------------------------- Pallas kernels ------------------------------

def _qkv_corr_kernel(q_ref, k_ref, v_ref,
                     wq_ref, bq_ref, wk_ref, bk_ref, wv_ref, bv_ref,
                     fr_ref, fi_ref, ir_ref, ii_ref,
                     vp_ref, mean_ref):
    """Fused Q/K/V projections + autocorrelation channel-mean for one batch.

    Per-step block shapes (leading batch dim squeezed by indexing with 0):
      q/k/v   : (1, L, d_model)   activations (bf16 or f32), time on sublanes
      wq/wk   : (d_model, H*E)    bq/bk: (1, H*E)
      wv      : (d_model, H*Dv)   bv:    (1, H*Dv)
      fr/fi   : (F, L)            Re/Im rows of the forward rfft matrix
      ir/ii   : (L, F)            irfft matrices for Re/Im spectrum parts
      vp      : (1, L, H*Dv)      value projection (output, lane-dense)
      mean    : (1, L, 1)         channel-mean autocorrelation (output)
    """
    # Projections: channels lane-dense, f32 accumulation on the MXU.
    q = jnp.dot(q_ref[0], wq_ref[...], preferred_element_type=jnp.float32) + bq_ref[...]
    k = jnp.dot(k_ref[0], wk_ref[...], preferred_element_type=jnp.float32) + bk_ref[...]
    v = jnp.dot(v_ref[0], wv_ref[...], preferred_element_type=jnp.float32) + bv_ref[...]
    vp_ref[0] = v

    # rfft(q) * conj(rfft(k)) -> irfft, as small DFT matmuls (time is the
    # contraction axis; channels stay on lanes, so no transposes are needed).
    qr = jnp.dot(fr_ref[...], q, preferred_element_type=jnp.float32)   # (F, H*E)
    qi = jnp.dot(fi_ref[...], q, preferred_element_type=jnp.float32)
    kr = jnp.dot(fr_ref[...], k, preferred_element_type=jnp.float32)
    ki = jnp.dot(fi_ref[...], k, preferred_element_type=jnp.float32)
    pr = qr * kr + qi * ki            # Re(Qf * conj(Kf))
    pi = qi * kr - qr * ki            # Im(Qf * conj(Kf))
    corr = (jnp.dot(ir_ref[...], pr, preferred_element_type=jnp.float32)
            + jnp.dot(ii_ref[...], pi, preferred_element_type=jnp.float32))  # (L, H*E)

    # corr is only needed through its channel mean (output_attention=False),
    # so it is reduced in-kernel and never written to HBM.
    mean_ref[0] = jnp.mean(corr, axis=-1, keepdims=True)


def _agg_outproj_kernel(m_ref, vp_ref, wo_ref, bo_ref, o_ref):
    """Fused time-delay aggregation (as an (L, L) matmul) + output projection."""
    agg = jnp.dot(m_ref[0], vp_ref[0], preferred_element_type=jnp.float32)  # (L, H*Dv)
    out = (jnp.dot(agg.astype(wo_ref.dtype), wo_ref[...],
                   preferred_element_type=jnp.float32) + bo_ref[...])
    o_ref[0] = out.astype(o_ref.dtype)


# ----------------------------- host-side helpers ----------------------------

def _dft_matrices(length):
    """Exact rfft / irfft as small real matmul operands (built once per call)."""
    nfreq = length // 2 + 1
    dft = jnp.fft.rfft(jnp.eye(length, dtype=jnp.float32), axis=1)       # (L, F) complex
    fr = jnp.real(dft).T.astype(jnp.float32)                             # (F, L)
    fi = jnp.imag(dft).T.astype(jnp.float32)                             # (F, L)
    ir = jnp.fft.irfft(jnp.eye(nfreq, dtype=jnp.float32), n=length, axis=1).T
    ii = jnp.fft.irfft(1j * jnp.eye(nfreq, dtype=jnp.complex64), n=length, axis=1).T
    return fr, fi, ir.astype(jnp.float32), ii.astype(jnp.float32)


def autocorrelation_layer_forward(params, queries, keys, values, attn_mask=None,
                                  *, factor=1, mxu_dtype=jnp.bfloat16):
    """Pallas forward of AutoCorrelationLayer (inference-path AutoCorrelation)."""
    del attn_mask  # AutoCorrelation ignores the attention mask.
    B, L, d_model = queries.shape
    S = keys.shape[1]
    if S < L:
        # TODO(synk): the L > S branch zero-pads the *projected* keys/values; it
        # needs an un-fused projection path and is not implemented here.
        raise NotImplementedError("L > S (decoder cross-correlation padding) not supported")
    keys = keys[:, :L]
    values = values[:, :L]

    HE = params["wq"].shape[1]          # n_heads * d_keys
    HD = params["wv"].shape[1]          # n_heads * d_values
    F = L // 2 + 1
    fr, fi, ir, ii = _dft_matrices(L)

    par = pltpu.CompilerParams(dimension_semantics=("parallel",))

    # ---- Kernel A: fused QKV projection + autocorrelation channel mean -----
    vp, mean_corr = pl.pallas_call(
        _qkv_corr_kernel,
        out_shape=(jax.ShapeDtypeStruct((B, L, HD), jnp.float32),
                   jax.ShapeDtypeStruct((B, L, 1), jnp.float32)),
        grid_spec=pltpu.PrefetchScalarGridSpec(
            num_scalar_prefetch=0,
            grid=(B,),
            in_specs=[
                pl.BlockSpec((1, L, d_model), lambda b: (b, 0, 0)),   # queries
                pl.BlockSpec((1, L, d_model), lambda b: (b, 0, 0)),   # keys
                pl.BlockSpec((1, L, d_model), lambda b: (b, 0, 0)),   # values
                pl.BlockSpec((d_model, HE), lambda b: (0, 0)),        # wq
                pl.BlockSpec((1, HE), lambda b: (0, 0)),              # bq
                pl.BlockSpec((d_model, HE), lambda b: (0, 0)),        # wk
                pl.BlockSpec((1, HE), lambda b: (0, 0)),              # bk
                pl.BlockSpec((d_model, HD), lambda b: (0, 0)),        # wv
                pl.BlockSpec((1, HD), lambda b: (0, 0)),              # bv
                pl.BlockSpec((F, L), lambda b: (0, 0)),               # fr
                pl.BlockSpec((F, L), lambda b: (0, 0)),               # fi
                pl.BlockSpec((L, F), lambda b: (0, 0)),               # ir
                pl.BlockSpec((L, F), lambda b: (0, 0)),               # ii
            ],
            out_specs=(
                pl.BlockSpec((1, L, HD), lambda b: (b, 0, 0)),
                pl.BlockSpec((1, L, 1), lambda b: (b, 0, 0)),
            ),
        ),
        compiler_params=par,
    )(queries.astype(mxu_dtype), keys.astype(mxu_dtype), values.astype(mxu_dtype),
      params["wq"].astype(mxu_dtype), params["bq"],
      params["wk"].astype(mxu_dtype), params["bk"],
      params["wv"].astype(mxu_dtype), params["bv"],
      fr, fi, ir, ii)

    # ---- glue: top-k delay selection ---------------------------------------
    # TODO(synk): top-k + softmax have no Pallas sort/top-k primitive; done in
    # plain JAX between the two kernels (tiny (B, L) tensors).
    mean_value = mean_corr[:, :, 0]                                   # (B, L)
    top_k = int(factor * math.log(L))
    w_top, delay = jax.lax.top_k(mean_value, top_k)                   # (B, top_k)
    tmp_corr = jax.nn.softmax(w_top, axis=-1)

    # Delay-aggregation matrix: M[b, t, s] = sum_i w_i * [(s - t) mod L == delay_i]
    # so that (M @ v)[t] = sum_i w_i * v[(t + delay_i) mod L]: the circular
    # top-k gather becomes a tiny MXU matmul (no dynamic slicing in-kernel).
    t_idx = jnp.arange(L, dtype=jnp.int32)
    shift = jnp.mod(t_idx[None, :] - t_idx[:, None], L)               # (L, L)
    onehot = (shift[None, :, :, None] == delay[:, None, None, :]).astype(jnp.float32)
    agg_mat = jnp.einsum("btsi,bi->bts", onehot, tmp_corr)            # (B, L, L)

    # ---- Kernel B: fused delay aggregation + output projection --------------
    out = pl.pallas_call(
        _agg_outproj_kernel,
        out_shape=jax.ShapeDtypeStruct((B, L, d_model), jnp.float32),
        grid_spec=pltpu.PrefetchScalarGridSpec(
            num_scalar_prefetch=0,
            grid=(B,),
            in_specs=[
                pl.BlockSpec((1, L, L), lambda b: (b, 0, 0)),          # agg_mat
                pl.BlockSpec((1, L, HD), lambda b: (b, 0, 0)),         # value projection
                pl.BlockSpec((HD, d_model), lambda b: (0, 0)),         # wo
                pl.BlockSpec((1, d_model), lambda b: (0, 0)),          # bo
            ],
            out_specs=pl.BlockSpec((1, L, d_model), lambda b: (b, 0, 0)),
        ),
        compiler_params=par,
    )(agg_mat, vp, params["wo"].astype(mxu_dtype), params["bo"])

    return out, None   # output_attention=False -> attn is None


# ------------------------------ pure-JAX reference ---------------------------

def autocorrelation_layer_reference(params, queries, keys, values, attn_mask=None,
                                    *, factor=1, mxu_dtype=jnp.bfloat16):
    """Reference using the true jnp.fft path and gather-style aggregation.

    Mirrors the Pallas precision policy: matmul operands cast to `mxu_dtype`
    with float32 accumulation; everything else stays float32.
    """
    del attn_mask
    B, L, d_model = queries.shape
    keys = keys[:, :L]
    values = values[:, :L]

    def linear(x, w, b):
        return jnp.dot(x.astype(mxu_dtype), w.astype(mxu_dtype),
                       preferred_element_type=jnp.float32) + b

    q = linear(queries, params["wq"], params["bq"])       # (B, L, H*E)
    k = linear(keys, params["wk"], params["bk"])
    v = linear(values, params["wv"], params["bv"])        # (B, L, H*Dv)

    qf = jnp.fft.rfft(jnp.transpose(q, (0, 2, 1)), axis=-1)
    kf = jnp.fft.rfft(jnp.transpose(k, (0, 2, 1)), axis=-1)
    corr = jnp.fft.irfft(qf * jnp.conj(kf), n=L, axis=-1)     # (B, H*E, L)

    mean_value = jnp.mean(corr, axis=1)                       # (B, L)
    top_k = int(factor * math.log(L))
    w_top, delay = jax.lax.top_k(mean_value, top_k)
    tmp_corr = jax.nn.softmax(w_top, axis=-1)

    v2 = jnp.concatenate([v, v], axis=1)                      # (B, 2L, H*Dv)
    agg = jnp.zeros_like(v)
    base = jnp.arange(L, dtype=jnp.int32)[None, :, None]
    for i in range(top_k):
        idx = base + delay[:, i][:, None, None]               # (B, L, 1)
        agg = agg + tmp_corr[:, i][:, None, None] * jnp.take_along_axis(v2, idx, axis=1)

    out = linear(agg, params["wo"], params["bo"])
    return out, None


# ------------------------------ parameter init -------------------------------

def _init_linear(key, fan_in, fan_out):
    kw, kb = jax.random.split(key)
    bound = 1.0 / math.sqrt(fan_in)
    w = jax.random.uniform(kw, (fan_in, fan_out), jnp.float32, -bound, bound)
    b = jax.random.uniform(kb, (1, fan_out), jnp.float32, -bound, bound)
    return w, b


def init_params(key, d_model, n_heads, d_keys=None, d_values=None):
    d_keys = d_keys or d_model // n_heads
    d_values = d_values or d_model // n_heads
    k1, k2, k3, k4 = jax.random.split(key, 4)
    wq, bq = _init_linear(k1, d_model, d_keys * n_heads)
    wk, bk = _init_linear(k2, d_model, d_keys * n_heads)
    wv, bv = _init_linear(k3, d_model, d_values * n_heads)
    wo, bo = _init_linear(k4, d_values * n_heads, d_model)
    return dict(wq=wq, bq=bq, wk=wk, bk=bk, wv=wv, bv=bv, wo=wo, bo=bo)


# ------------------------------------ main -----------------------------------

if __name__ == "__main__":
    import numpy as np

    key = jax.random.PRNGKey(0)
    k_amp, k_nq, k_nk, k_v, k_p = jax.random.split(key, 5)

    B, L, S, d_model, n_heads = 2, 16, 16, 32, 4

    # Test signal with a strong period-8 component shared by queries/keys so
    # the mean autocorrelation has an unambiguous top-k gap; this makes the
    # cross-implementation check insensitive to tie-breaking in delay selection.
    t = jnp.arange(L, dtype=jnp.float32)
    base = jnp.sin(2.0 * jnp.pi * t / 8.0)                                    # (L,)
    amp = jax.random.normal(k_amp, (B, 1, d_model), jnp.float32)
    queries = amp * base[None, :, None] + 0.25 * jax.random.normal(k_nq, (B, L, d_model))
    keys = amp * base[None, :, None] + 0.25 * jax.random.normal(k_nk, (B, S, d_model))
    values = jax.random.normal(k_v, (B, S, d_model), jnp.float32)

    params = init_params(k_p, d_model, n_heads)
    # Blend the key projection towards the query projection so the projected
    # cross-correlation keeps a clear rank-2 / rank-3 peak separation.
    params["wk"] = 0.5 * (params["wk"] + params["wq"])

    for mxu_dtype in (jnp.bfloat16, jnp.float32):
        out, attn = autocorrelation_layer_forward(
            params, queries, keys, values, mxu_dtype=mxu_dtype)
        out = jax.block_until_ready(out)
        assert out.shape == (B, L, d_model)
        assert attn is None
        ref, _ = autocorrelation_layer_reference(
            params, queries, keys, values, mxu_dtype=mxu_dtype)
        ref = jax.block_until_ready(ref)
        # Tolerance covers bf16-operand rounding and XLA-vs-Mosaic matmul
        # precision defaults; structural errors are orders of magnitude larger.
        np.testing.assert_allclose(np.asarray(out), np.asarray(ref),
                                   rtol=2e-2, atol=2e-2)

    print("KERNEL_OK")
</pallas_src>

<mosaic_0001>
module attributes {stable_mosaic.version = 11 : i64} {
  func.func @_qkv_corr_kernel(%arg0: i32, %arg1: memref<1x16x32xbf16, #tpu.memory_space<vmem>>, %arg2: memref<1x16x32xbf16, #tpu.memory_space<vmem>>, %arg3: memref<1x16x32xbf16, #tpu.memory_space<vmem>>, %arg4: memref<32x32xbf16, #tpu.memory_space<vmem>>, %arg5: memref<1x32xf32, #tpu.memory_space<vmem>>, %arg6: memref<32x32xbf16, #tpu.memory_space<vmem>>, %arg7: memref<1x32xf32, #tpu.memory_space<vmem>>, %arg8: memref<32x32xbf16, #tpu.memory_space<vmem>>, %arg9: memref<1x32xf32, #tpu.memory_space<vmem>>, %arg10: memref<9x16xf32, #tpu.memory_space<vmem>>, %arg11: memref<9x16xf32, #tpu.memory_space<vmem>>, %arg12: memref<16x9xf32, #tpu.memory_space<vmem>>, %arg13: memref<16x9xf32, #tpu.memory_space<vmem>>, %arg14: memref<1x16x32xf32, #tpu.memory_space<vmem>>, %arg15: memref<1x16x1xf32, #tpu.memory_space<vmem>>) attributes {dimension_semantics = [#tpu.dimension_semantics<parallel>], iteration_bounds = array<i64: 2>, scalar_prefetch = 0 : i64, scratch_operands = 0 : i64, tpu.core_type = #tpu.core_type<tc>, window_params = [{transform_indices = @transform_0, window_bounds = array<i64: 1, 16, 32>}, {transform_indices = @transform_1, window_bounds = array<i64: 1, 16, 32>}, {transform_indices = @transform_2, window_bounds = array<i64: 1, 16, 32>}, {pipeline_mode = #tpu.pipeline_mode<synchronous>, transform_indices = @transform_3, window_bounds = array<i64: 32, 32>}, {pipeline_mode = #tpu.pipeline_mode<synchronous>, transform_indices = @transform_4, window_bounds = array<i64: 1, 32>}, {pipeline_mode = #tpu.pipeline_mode<synchronous>, transform_indices = @transform_5, window_bounds = array<i64: 32, 32>}, {pipeline_mode = #tpu.pipeline_mode<synchronous>, transform_indices = @transform_6, window_bounds = array<i64: 1, 32>}, {pipeline_mode = #tpu.pipeline_mode<synchronous>, transform_indices = @transform_7, window_bounds = array<i64: 32, 32>}, {pipeline_mode = #tpu.pipeline_mode<synchronous>, transform_indices = @transform_8, window_bounds = array<i64: 1, 32>}, {pipeline_mode = #tpu.pipeline_mode<synchronous>, transform_indices = @transform_9, window_bounds = array<i64: 9, 16>}, {pipeline_mode = #tpu.pipeline_mode<synchronous>, transform_indices = @transform_10, window_bounds = array<i64: 9, 16>}, {pipeline_mode = #tpu.pipeline_mode<synchronous>, transform_indices = @transform_11, window_bounds = array<i64: 16, 9>}, {pipeline_mode = #tpu.pipeline_mode<synchronous>, transform_indices = @transform_12, window_bounds = array<i64: 16, 9>}, {transform_indices = @transform_13, window_bounds = array<i64: 1, 16, 32>}, {transform_indices = @transform_14, window_bounds = array<i64: 1, 16, 1>}]} {
    %c0 = arith.constant 0 : index
    %c0_0 = arith.constant 0 : index
    %c0_1 = arith.constant 0 : index
    %0 = vector.load %arg1[%c0, %c0_0, %c0_1] : memref<1x16x32xbf16, #tpu.memory_space<vmem>>, vector<1x16x32xbf16>
    %1 = vector.shape_cast %0 : vector<1x16x32xbf16> to vector<16x32xbf16>
    %c0_2 = arith.constant 0 : index
    %c0_3 = arith.constant 0 : index
    %2 = vector.load %arg4[%c0_2, %c0_3] : memref<32x32xbf16, #tpu.memory_space<vmem>>, vector<32x32xbf16>
    %cst = arith.constant dense<0.000000e+00> : vector<16x32xf32>
    %3 = tpu.matmul %1, %2, %cst {dimension_numbers = #tpu.dot_dimension_numbers<[1], [0], [0], [1], [0, 0, 1, 1], [], []>} : vector<16x32xbf16>, vector<32x32xbf16>, vector<16x32xf32> -> vector<16x32xf32>
    %c0_4 = arith.constant 0 : index
    %c0_5 = arith.constant 0 : index
    %4 = vector.load %arg5[%c0_4, %c0_5] : memref<1x32xf32, #tpu.memory_space<vmem>>, vector<1x32xf32>
    %5 = vector.broadcast %4 : vector<1x32xf32> to vector<16x32xf32>
    %6 = arith.addf %3, %5 : vector<16x32xf32>
    %c0_6 = arith.constant 0 : index
    %c0_7 = arith.constant 0 : index
    %c0_8 = arith.constant 0 : index
    %7 = vector.load %arg2[%c0_6, %c0_7, %c0_8] : memref<1x16x32xbf16, #tpu.memory_space<vmem>>, vector<1x16x32xbf16>
    %8 = vector.shape_cast %7 : vector<1x16x32xbf16> to vector<16x32xbf16>
    %c0_9 = arith.constant 0 : index
    %c0_10 = arith.constant 0 : index
    %9 = vector.load %arg6[%c0_9, %c0_10] : memref<32x32xbf16, #tpu.memory_space<vmem>>, vector<32x32xbf16>
    %cst_11 = arith.constant dense<0.000000e+00> : vector<16x32xf32>
    %10 = tpu.matmul %8, %9, %cst_11 {dimension_numbers = #tpu.dot_dimension_numbers<[1], [0], [0], [1], [0, 0, 1, 1], [], []>} : vector<16x32xbf16>, vector<32x32xbf16>, vector<16x32xf32> -> vector<16x32xf32>
    %c0_12 = arith.constant 0 : index
    %c0_13 = arith.constant 0 : index
    %11 = vector.load %arg7[%c0_12, %c0_13] : memref<1x32xf32, #tpu.memory_space<vmem>>, vector<1x32xf32>
    %12 = vector.broadcast %11 : vector<1x32xf32> to vector<16x32xf32>
    %13 = arith.addf %10, %12 : vector<16x32xf32>
    %c0_14 = arith.constant 0 : index
    %c0_15 = arith.constant 0 : index
    %c0_16 = arith.constant 0 : index
    %14 = vector.load %arg3[%c0_14, %c0_15, %c0_16] : memref<1x16x32xbf16, #tpu.memory_space<vmem>>, vector<1x16x32xbf16>
    %15 = vector.shape_cast %14 : vector<1x16x32xbf16> to vector<16x32xbf16>
    %c0_17 = arith.constant 0 : index
    %c0_18 = arith.constant 0 : index
    %16 = vector.load %arg8[%c0_17, %c0_18] : memref<32x32xbf16, #tpu.memory_space<vmem>>, vector<32x32xbf16>
    %cst_19 = arith.constant dense<0.000000e+00> : vector<16x32xf32>
    %17 = tpu.matmul %15, %16, %cst_19 {dimension_numbers = #tpu.dot_dimension_numbers<[1], [0], [0], [1], [0, 0, 1, 1], [], []>} : vector<16x32xbf16>, vector<32x32xbf16>, vector<16x32xf32> -> vector<16x32xf32>
    %c0_20 = arith.constant 0 : index
    %c0_21 = arith.constant 0 : index
    %18 = vector.load %arg9[%c0_20, %c0_21] : memref<1x32xf32, #tpu.memory_space<vmem>>, vector<1x32xf32>
    %19 = vector.broadcast %18 : vector<1x32xf32> to vector<16x32xf32>
    %20 = arith.addf %17, %19 : vector<16x32xf32>
    %c0_22 = arith.constant 0 : index
    %c0_23 = arith.constant 0 : index
    %c0_24 = arith.constant 0 : index
    %21 = vector.load %arg14[%c0_22, %c0_23, %c0_24] : memref<1x16x32xf32, #tpu.memory_space<vmem>>, vector<1x16x32xf32>
    %22 = vector.shape_cast %21 : vector<1x16x32xf32> to vector<16x32xf32>
    %23 = vector.shape_cast %20 : vector<16x32xf32> to vector<1x16x32xf32>
    tpu.vector_store %arg14[%c0_22, %c0_23, %c0_24], %23 {strides = array<i32>} : memref<1x16x32xf32, #tpu.memory_space<vmem>>, vector<1x16x32xf32>,
    %c0_25 = arith.constant 0 : index
    %c0_26 = arith.constant 0 : index
    %24 = vector.load %arg10[%c0_25, %c0_26] : memref<9x16xf32, #tpu.memory_space<vmem>>, vector<9x16xf32>
    %cst_27 = arith.constant dense<0.000000e+00> : vector<9x32xf32>
    %25 = tpu.matmul %24, %6, %cst_27 {dimension_numbers = #tpu.dot_dimension_numbers<[1], [0], [0], [1], [0, 0, 1, 1], [], []>} : vector<9x16xf32>, vector<16x32xf32>, vector<9x32xf32> -> vector<9x32xf32>
    %c0_28 = arith.constant 0 : index
    %c0_29 = arith.constant 0 : index
    %26 = vector.load %arg11[%c0_28, %c0_29] : memref<9x16xf32, #tpu.memory_space<vmem>>, vector<9x16xf32>
    %cst_30 = arith.constant dense<0.000000e+00> : vector<9x32xf32>
    %27 = tpu.matmul %26, %6, %cst_30 {dimension_numbers = #tpu.dot_dimension_numbers<[1], [0], [0], [1], [0, 0, 1, 1], [], []>} : vector<9x16xf32>, vector<16x32xf32>, vector<9x32xf32> -> vector<9x32xf32>
    %c0_31 = arith.constant 0 : index
    %c0_32 = arith.constant 0 : index
    %28 = vector.load %arg10[%c0_31, %c0_32] : memref<9x16xf32, #tpu.memory_space<vmem>>, vector<9x16xf32>
    %cst_33 = arith.constant dense<0.000000e+00> : vector<9x32xf32>
    %29 = tpu.matmul %28, %13, %cst_33 {dimension_numbers = #tpu.dot_dimension_numbers<[1], [0], [0], [1], [0, 0, 1, 1], [], []>} : vector<9x16xf32>, vector<16x32xf32>, vector<9x32xf32> -> vector<9x32xf32>
    %c0_34 = arith.constant 0 : index
    %c0_35 = arith.constant 0 : index
    %30 = vector.load %arg11[%c0_34, %c0_35] : memref<9x16xf32, #tpu.memory_space<vmem>>, vector<9x16xf32>
    %cst_36 = arith.constant dense<0.000000e+00> : vector<9x32xf32>
    %31 = tpu.matmul %30, %13, %cst_36 {dimension_numbers = #tpu.dot_dimension_numbers<[1], [0], [0], [1], [0, 0, 1, 1], [], []>} : vector<9x16xf32>, vector<16x32xf32>, vector<9x32xf32> -> vector<9x32xf32>
    %32 = arith.mulf %25, %29 : vector<9x32xf32>
    %33 = arith.mulf %27, %31 : vector<9x32xf32>
    %34 = arith.addf %32, %33 : vector<9x32xf32>
    %35 = arith.mulf %27, %29 : vector<9x32xf32>
    %36 = arith.mulf %25, %31 : vector<9x32xf32>
    %37 = arith.subf %35, %36 : vector<9x32xf32>
    %c0_37 = arith.constant 0 : index
    %c0_38 = arith.constant 0 : index
    %38 = vector.load %arg12[%c0_37, %c0_38] : memref<16x9xf32, #tpu.memory_space<vmem>>, vector<16x9xf32>
    %cst_39 = arith.constant dense<0.000000e+00> : vector<16x32xf32>
    %39 = tpu.matmul %38, %34, %cst_39 {dimension_numbers = #tpu.dot_dimension_numbers<[1], [0], [0], [1], [0, 0, 1, 1], [], []>} : vector<16x9xf32>, vector<9x32xf32>, vector<16x32xf32> -> vector<16x32xf32>
    %c0_40 = arith.constant 0 : index
    %c0_41 = arith.constant 0 : index
    %40 = vector.load %arg13[%c0_40, %c0_41] : memref<16x9xf32, #tpu.memory_space<vmem>>, vector<16x9xf32>
    %cst_42 = arith.constant dense<0.000000e+00> : vector<16x32xf32>
    %41 = tpu.matmul %40, %37, %cst_42 {dimension_numbers = #tpu.dot_dimension_numbers<[1], [0], [0], [1], [0, 0, 1, 1], [], []>} : vector<16x9xf32>, vector<9x32xf32>, vector<16x32xf32> -> vector<16x32xf32>
    %42 = arith.addf %39, %41 : vector<16x32xf32>
    %cst_43 = arith.constant dense<0.000000e+00> : vector<16xf32>
    %43 = vector.multi_reduction <add>, %42, %cst_43 [1] : vector<16x32xf32> to vector<16xf32>
    %44 = vector.shape_cast %43 : vector<16xf32> to vector<16x1xf32>
    %cst_44 = arith.constant 3.200000e+01 : f32
    %45 = vector.broadcast %cst_44 : f32 to vector<16x1xf32>
    %46 = arith.divf %44, %45 : vector<16x1xf32>
    %c0_45 = arith.constant 0 : index
    %c0_46 = arith.constant 0 : index
    %c0_47 = arith.constant 0 : index
    %47 = vector.load %arg15[%c0_45, %c0_46, %c0_47] : memref<1x16x1xf32, #tpu.memory_space<vmem>>, vector<1x16x1xf32>
    %48 = vector.shape_cast %47 : vector<1x16x1xf32> to vector<16x1xf32>
    %49 = vector.shape_cast %46 : vector<16x1xf32> to vector<1x16x1xf32>
    tpu.vector_store %arg15[%c0_45, %c0_46, %c0_47], %49 {strides = array<i32>} : memref<1x16x1xf32, #tpu.memory_space<vmem>>, vector<1x16x1xf32>,
    return
  }
  func.func @transform_0(%arg0: i32) -> (i32, i32, i32) {
    %c0_i32 = arith.constant 0 : i32
    %c0_i32_0 = arith.constant 0 : i32
    %c0_i32_1 = arith.constant 0 : i32
    return %arg0, %c0_i32, %c0_i32_0 : i32, i32, i32
  }
  func.func @transform_1(%arg0: i32) -> (i32, i32, i32) {
    %c0_i32 = arith.constant 0 : i32
    %c0_i32_0 = arith.constant 0 : i32
    %c0_i32_1 = arith.constant 0 : i32
    return %arg0, %c0_i32, %c0_i32_0 : i32, i32, i32
  }
  func.func @transform_2(%arg0: i32) -> (i32, i32, i32) {
    %c0_i32 = arith.constant 0 : i32
    %c0_i32_0 = arith.constant 0 : i32
    %c0_i32_1 = arith.constant 0 : i32
    return %arg0, %c0_i32, %c0_i32_0 : i32, i32, i32
  }
  func.func @transform_3(%arg0: i32) -> (i32, i32) {
    %c0_i32 = arith.constant 0 : i32
    %c0_i32_0 = arith.constant 0 : i32
    %c0_i32_1 = arith.constant 0 : i32
    return %c0_i32, %c0_i32_0 : i32, i32
  }
  func.func @transform_4(%arg0: i32) -> (i32, i32) {
    %c0_i32 = arith.constant 0 : i32
    %c0_i32_0 = arith.constant 0 : i32
    %c0_i32_1 = arith.constant 0 : i32
    return %c0_i32, %c0_i32_0 : i32, i32
  }
  func.func @transform_5(%arg0: i32) -> (i32, i32) {
    %c0_i32 = arith.constant 0 : i32
    %c0_i32_0 = arith.constant 0 : i32
    %c0_i32_1 = arith.constant 0 : i32
    return %c0_i32, %c0_i32_0 : i32, i32
  }
  func.func @transform_6(%arg0: i32) -> (i32, i32) {
    %c0_i32 = arith.constant 0 : i32
    %c0_i32_0 = arith.constant 0 : i32
    %c0_i32_1 = arith.constant 0 : i32
    return %c0_i32, %c0_i32_0 : i32, i32
  }
  func.func @transform_7(%arg0: i32) -> (i32, i32) {
    %c0_i32 = arith.constant 0 : i32
    %c0_i32_0 = arith.constant 0 : i32
    %c0_i32_1 = arith.constant 0 : i32
    return %c0_i32, %c0_i32_0 : i32, i32
  }
  func.func @transform_8(%arg0: i32) -> (i32, i32) {
    %c0_i32 = arith.constant 0 : i32
    %c0_i32_0 = arith.constant 0 : i32
    %c0_i32_1 = arith.constant 0 : i32
    return %c0_i32, %c0_i32_0 : i32, i32
  }
  func.func @transform_9(%arg0: i32) -> (i32, i32) {
    %c0_i32 = arith.constant 0 : i32
    %c0_i32_0 = arith.constant 0 : i32
    %c0_i32_1 = arith.constant 0 : i32
    return %c0_i32, %c0_i32_0 : i32, i32
  }
  func.func @transform_10(%arg0: i32) -> (i32, i32) {
    %c0_i32 = arith.constant 0 : i32
    %c0_i32_0 = arith.constant 0 : i32
    %c0_i32_1 = arith.constant 0 : i32
    return %c0_i32, %c0_i32_0 : i32, i32
  }
  func.func @transform_11(%arg0: i32) -> (i32, i32) {
    %c0_i32 = arith.constant 0 : i32
    %c0_i32_0 = arith.constant 0 : i32
    %c0_i32_1 = arith.constant 0 : i32
    return %c0_i32, %c0_i32_0 : i32, i32
  }
  func.func @transform_12(%arg0: i32) -> (i32, i32) {
    %c0_i32 = arith.constant 0 : i32
    %c0_i32_0 = arith.constant 0 : i32
    %c0_i32_1 = arith.constant 0 : i32
    return %c0_i32, %c0_i32_0 : i32, i32
  }
  func.func @transform_13(%arg0: i32) -> (i32, i32, i32) {
    %c0_i32 = arith.constant 0 : i32
    %c0_i32_0 = arith.constant 0 : i32
    %c0_i32_1 = arith.constant 0 : i32
    return %arg0, %c0_i32, %c0_i32_0 : i32, i32, i32
  }
  func.func @transform_14(%arg0: i32) -> (i32, i32, i32) {
    %c0_i32 = arith.constant 0 : i32
    %c0_i32_0 = arith.constant 0 : i32
    %c0_i32_1 = arith.constant 0 : i32
    return %arg0, %c0_i32, %c0_i32_0 : i32, i32, i32
  }
}

</mosaic_0001>

<bundles_post_ra>
// kernel: tpu_custom_call.1
= control target key start
LH: loop header
LB: loop body
LE: loop exit
PB: predicated region body
PF: predicated region fallthrough
CT: control target
= control target key end

     0   :  { %s2867_s0 = inlined_call_operand.hbm [shape: bf16[2,16,32], index: 0, kind: input, shape index: {}]   ;;  %s2868_s1 = inlined_call_operand.hbm [shape: bf16[2,16,32], index: 1, kind: input, shape index: {}]   ;;  %s2869_s2 = inlined_call_operand.hbm [shape: bf16[2,16,32], index: 2, kind: input, shape index: {}]   ;;  %s2870_s3 = inlined_call_operand.hbm [shape: bf16[32,32], index: 3, kind: input, shape index: {}]   ;;  %s2871_s4 = inlined_call_operand.vmem [shape: f32[1,32], index: 4, kind: input, shape index: {}]   ;;  %s2872_s5 = inlined_call_operand.vmem [shape: bf16[32,32], index: 5, kind: input, shape index: {}]   ;;  %s2873_s6 = inlined_call_operand.vmem [shape: f32[1,32], index: 6, kind: input, shape index: {}]   ;;  %s2874_s7 = inlined_call_operand.hbm [shape: bf16[32,32], index: 7, kind: input, shape index: {}]   ;;  %s2875_s8 = inlined_call_operand.hbm [shape: f32[1,32], index: 8, kind: input, shape index: {}]   ;;  %s2876_s9 = inlined_call_operand.vmem [shape: f32[9,16], index: 9, kind: input, shape index: {}]   ;;  %s2877_s10 = inlined_call_operand.hbm [shape: f32[9,16], index: 10, kind: input, shape index: {}]   ;;  %s2878_s11 = inlined_call_operand.hbm [shape: f32[16,9], index: 11, kind: input, shape index: {}]   ;;  %s2879_s12 = inlined_call_operand.hbm [shape: f32[16,9], index: 12, kind: input, shape index: {}]   ;;  %s2880_s13 = inlined_call_operand.hbm [shape: f32[2,16,32], index: 13, kind: output, shape index: {0}]   ;;  %s2881_s14 = inlined_call_operand.vmem [shape: f32[2,16,1], index: 14, kind: output, shape index: {1}]  }
   0x1   :  { %2915 = sst [smem:[#allocation31_spill]] %s2868_s1 }
   0x2   :  { %2916 = sst [smem:[#allocation32_spill]] %s2870_s3 }
   0x3   :  { %2917 = sst [smem:[#allocation33_spill]] %s2871_s4 }
   0x4   :  { %2918 = sst [smem:[#allocation34_spill]] %s2872_s5 }
   0x5   :  { %2919 = sst [smem:[#allocation35_spill]] %s2873_s6 }
   0x6   :  { %2920 = sst [smem:[#allocation36_spill]] %s2874_s7 }
   0x7   :  { %2921 = sst [smem:[#allocation37_spill]] %s2875_s8 }
   0x8   :  { %2922 = sst [smem:[#allocation38_spill]] %s2876_s9 }
   0x9   :  { %2923 = sst [smem:[#allocation39_spill]] %s2878_s11 }
   0xa   :  { %2924 = sst [smem:[#allocation40_spill]] %s2880_s13 }
   0xb   :  { %2925 = sst [smem:[#allocation41_spill]] %s2881_s14 }
   0xc   :  { %20 = vsyncpa [#allocation3], 0 }
   0xd   :  { %22 = vsyncpa [#allocation3 + $0x1], 0 }
   0xe   :  { %23 = vsyncpa [#allocation6], 0 }
   0xf   :  { %25 = vsyncpa [#allocation6 + $0x1], 0 }
  0x10   :  { %26 = vsyncpa [#allocation9], 0 }
  0x11   :  { %27 = vsyncpa [#allocation12], 0 }
  0x12   :  { %28 = vsyncpa [#allocation15], 0 }
  0x13   :  { %29 = vsyncpa [#allocation4], 0 }
  0x14   :  { %31 = vsyncpa [#allocation4 + $0x1], 0  ;;  %s2392_s29 = smov 0   ;;  %s2394_s30 = smov 0  }
  0x15   :  { %s2396_s15 = smov 0   ;;  %s2398_s16 = smov 0  }
  0x16 LB: > { %2926 = sst [smem:[#allocation24_spill]] %s2284_s29  ;;  %s2298_s17 = smov [#allocation8]   ;;  %s2296_s16 = sphi %s2398_s16, %s2978_s16   ;;  %s2292_s15 = sphi %s2396_s15, %s2982_s15   ;;  %s2288_s30 = sphi %s2394_s30, %s2981_s30   ;;  %s2284_s29 = sphi %s2392_s29, %s2980_s29  }
  0x17   : > { %2927 = sst [smem:[#allocation25_spill]] %s2296_s16  ;;  %s394_s18 = sshll.u32 %s2298_s17, 4  ;;  %s2418_s18 = int_to_ptr.vmem [resolvable:$true] %s394_s18 }
  0x18   : > { %s2413_s19 = sadd.s32 4294967295, %s2296_s16   ;;  %p1623_p0 = scmp.ge.s32.totalorder %s2296_s16, 1 }
  0x19   : > { %2928 = sst [smem:[#allocation26_spill]] %s2413_s19  ;;  %p2885_p1 = scmp.eq.s32.totalorder %s2413_s19, 0 }
  0x1a   : > { %p382_p2 = scmp.lt.s32.totalorder %s2296_s16, 3  ;;  %s2299_s21 = smov [#allocation11]  }
  0x1b   : > { %s430_s22 = sshll.u32 %s2299_s21, 4  ;;  %s2300_s24 = smov [#allocation14]   ;;  %s2433_s22 = int_to_ptr.vmem [resolvable:$true] %s430_s22 }
  0x1c   : > { %p2420_p3 = pnand %p1623_p0, %p382_p2  ;;  %s2435_s25 = sshll.u32 %s2300_s24, 4  ;;  %s457_s25 = int_to_ptr.vmem [resolvable:$true] %s2435_s25 }
  0x1d   : > { %s2931_s3 = sld [smem:[#allocation32_spill]] }
  0x1e   : > { %s2929_s20 = scalar_select %p2420_p3, 1, 0 }
  0x1f   : > { %p1853_p5 = pneg %p2420_p3 }
  0x21   : > { %p2429_p6 = pnand %p1853_p5, %p2885_p1 }
  0x23   : > { %s2930_s23 = scalar_select %p2429_p6, 1, 0 }
  0x24   : > { %s1956_s28 = scalar_lea.hbm %s2931_s3, 256  ;;  %p2445_p8 = pneg %p2429_p6 }
  0x25   : > { %p1957_p7 = scmp.ne.s32.totalorder %s2931_s3, %s1956_s28  ;;  %p1963_p11 = scmp.lt.u32.totalorder %s1956_s28, %s2931_s3 }
  0x26   : > { %s2932_s21 = scalar_select %p2445_p8, 1, 0 }
  0x27   : > { %p1959_p9 = pnand %p2445_p8, %p1957_p7 }
  0x29   : > { %p1960_p10 = pneg %p1959_p9 }
  0x2b   : > { %p1965_p12 = pnand %p1963_p11, %p1960_p10 }
  0x2d   : > { %1968 = shalt.err (!%p1965_p12)
}
  0x2e   : > { %s1969_s14 = scalar_lea.vmem %s2418_s18, 256  ;;  %p1977_p5 = scmp.lt.s32.totalorder %s2418_s18, %s2418_s18 }
  0x2f   : > { %p1970_p13 = scmp.ne.s32.totalorder %s2418_s18, %s1969_s14  ;;  %p1978_p4 = scmp.lt.s32.totalorder %s1969_s14, %s1969_s14 }
  0x31   : > { %p1972_p0 = pnand %p1970_p13, %p2445_p8  ;;  %p1979_p7 = por %p1978_p4, %p1977_p5 }
  0x33   : > { %p1973_p2 = pneg %p1972_p0 }
  0x35   : > { %p1980_p9 = pnand %p1979_p7, %p1973_p2 }
  0x37   : > { %1983 = shalt.err (!%p1980_p9)
}
  0x38   : > { %s2891_s26 = smov 64   ;;  %s2894_s13 = smov 4  }
  0x39   : > { %1856 = dma.hbm_to_vmem [thread:$0]  (!%p2429_p6), %s2931_s3, 256, %s2418_s18, [#allocation9], %s2891_s26, %s2891_s26, %s2894_s13  }
  0x3a   : > { %s2933_s8 = sld [smem:[#allocation37_spill]] }
  0x40   : > { %s1984_s14 = scalar_lea.hbm %s2933_s8, 16 }
  0x41   : > { %p1985_p4 = scmp.ne.s32.totalorder %s2933_s8, %s1984_s14  ;;  %p1991_p12 = scmp.lt.u32.totalorder %s1984_s14, %s2933_s8 }
  0x43   : > { %p1987_p10 = pnand %p1985_p4, %p2445_p8 }
  0x45   : > { %p1988_p11 = pneg %p1987_p10 }
  0x47   : > { %p1993_p13 = pnand %p1991_p12, %p1988_p11 }
  0x49   : > { %1996 = shalt.err (!%p1993_p13)
}
  0x4a   : > { %s1997_s18 = scalar_lea.vmem %s2433_s22, 16  ;;  %s2004_s4 = scalar_lea.vmem %s2433_s22, 32 }
  0x4b   : > { %p1998_p0 = scmp.ne.s32.totalorder %s2433_s22, %s1997_s18  ;;  %p2005_p7 = scmp.lt.s32.totalorder %s2433_s22, %s2433_s22 }
  0x4c   : > { %p2006_p9 = scmp.lt.s32.totalorder %s2004_s4, %s1997_s18 }
  0x4d   : > { %p2000_p2 = pnand %p1998_p0, %p2445_p8 }
  0x4e   : > { %p2007_p4 = por %p2006_p9, %p2005_p7 }
  0x4f   : > { %p2001_p5 = pneg %p2000_p2 }
  0x51   : > { %p2008_p10 = pnand %p2007_p4, %p2001_p5 }
  0x53   : > { %2011 = shalt.err (!%p2008_p10)
}
  0x54   : > { %1862 = dma.hbm_to_vmem [thread:$0]  (!%p2429_p6), %s2933_s8, 16, %s2433_s22, [#allocation12]  }
  0x55   : > { %s2934_s11 = sld [smem:[#allocation39_spill]] }
  0x5b   : > { %s2012_s28 = scalar_lea.hbm %s2934_s11, 256 }
  0x5c   : > { %p2013_p11 = scmp.ne.s32.totalorder %s2934_s11, %s2012_s28  ;;  %p2019_p0 = scmp.lt.u32.totalorder %s2012_s28, %s2934_s11 }
  0x5e   : > { %p2015_p12 = pnand %p2013_p11, %p2445_p8 }
  0x60   : > { %p2016_p13 = pneg %p2015_p12 }
  0x62   : > { %p2021_p2 = pnand %p2019_p0, %p2016_p13 }
  0x64   : > { %2024 = shalt.err (!%p2021_p2)
}
  0x65   : > { %s2025_s4 = scalar_lea.vmem %s457_s25, 256  ;;  %p2033_p4 = scmp.lt.s32.totalorder %s457_s25, %s457_s25 }
  0x66   : > { %p2026_p5 = scmp.ne.s32.totalorder %s457_s25, %s2025_s4  ;;  %p2034_p10 = scmp.lt.s32.totalorder %s2025_s4, %s2025_s4 }
  0x68   : > { %p2028_p7 = pnand %p2026_p5, %p2445_p8  ;;  %p2035_p1 = por %p2034_p10, %p2033_p4 }
  0x6a   : > { %p2029_p9 = pneg %p2028_p7 }
  0x6c   : > { %p2036_p3 = pnand %p2035_p1, %p2029_p9 }
  0x6e   : > { %2039 = shalt.err (!%p2036_p3)
}
  0x6f   : > { %s2887_s22 = smov 128   ;;  %s2889_s5 = smov 8  }
  0x70   : > { %1868 = dma.hbm_to_vmem [thread:$0]  (!%p2429_p6), %s2934_s11, 256, %s457_s25, [#allocation15], %s2887_s22, %s2887_s22, %s2889_s5  }
  0x71   : > { %s1622_s27 = sadd.s32 4294967294, %s2296_s16   ;;  %s2517_s28 = sadd.s32 1, %s2296_s16  }
  0x72   : > { %2935 = sst [smem:[#allocation27_spill]] %s2517_s28  ;;  %s44_s17 = sadd.s32 1, %s2292_s15 }
  0x73   : > { %s41_s24 = ssub.s32 %s2296_s16, %s2517_s28  ;;  %p51_p1 = scmp.ne.s32.totalorder %s2292_s15, %s2288_s30 }
  0x74   : > { %p42_p3 = scmp.eq.s32.totalorder %s41_s24, 0  ;;  %p52_p11 = scmp.eq.s32.totalorder %s2296_s16, 0 }
  0x75   : > { %p57_p12 = scmp.ne.s32.totalorder %s2288_s30, %s2284_s29  ;;  %p343_p13 = scmp.eq.s32.totalorder %s2413_s19, 1 }
  0x76   : > { %s2529_s14 = scalar_select %p42_p3, %s2292_s15, %s44_s17  }
  0x77   : > { %p53_p0 = por %p52_p11, %p51_p1  ;;  %p2937_p2 = scmp.eq.s32.totalorder %s2413_s19, 0 }
  0x78   : > { %2936 = sst [smem:[#allocation28_spill]] %s2529_s14  ;;  %p2537_p7 = por %p343_p13, %p51_p1 }
  0x79   : > { %p2533_p5 = por %p2937_p2, %p57_p12  ;;  %p349_p9 = scmp.eq.s32.totalorder %s1622_s27, 1 }
  0x7a   : > { %s2939_s18 = scalar_select %p2537_p7, 1, 0 }
  0x7b   : > { %s2938_s25 = scalar_select %p2533_p5, 1, 0 }
  0x7c   : > { %2940 = sst [smem:[#allocation29_spill]] %s2939_s18  ;;  %p1892_p4 = scmp.lt.s32.totalorder %s2296_s16, 2 }
  0x7d   : > { %s2893_s4 = sand.u32 1, %s2292_s15   ;;  %p2543_p10 = por %p349_p9, %p57_p12 }
  0x7e   : > { %s2549_s9 = sshll.u32 %s2893_s4, 3  ;;  %s2552_s17 = sshll.u32 %s2296_s16, 7 }
  0x7f   : > { %s2941_s6 = scalar_select %p2543_p10, 1, 0 }
  0x80   : > { %p2554_p3 = pnand %p1892_p4, %p53_p0  ;;  %s504_s22 = sand.u32 1, %s2296_s16  }
  0x81   : > { %2942 = sst [smem:[#allocation30_spill]] %s2941_s6  ;;  %s2944_s1 = sld [smem:[#allocation31_spill]] }
  0x82   : > { %s2943_s24 = scalar_select %p2554_p3, 1, 0 }
  0x83   : > { %s508_s4 = scalar_lea.vmem [#allocation5], %s2549_s9  ;;  %s2568_s3 = scalar_lea.sflag [#allocation6], %s504_s22 }
  0x84   : > { %s515_s13 = sshll.u32 %s508_s4, 4  ;;  %p2574_p11 = pneg %p2554_p3  ;;  %s2566_s13 = int_to_ptr.vmem [resolvable:$true] %s515_s13 }
  0x86   : > { %s2945_s11 = scalar_select %p2574_p11, 1, 0 }
  0x87   : > { %s2563_s26 = scalar_lea.hbm %s2944_s1, %s2552_s17  ;;  %s2045_s14 = scalar_lea.hbm %s2944_s1, 256 }
  0x88   : > { %s2040_s8 = scalar_lea.hbm %s2563_s26, 128  ;;  %p2046_p0 = scmp.lt.u32.totalorder %s2563_s26, %s2944_s1 }
  0x89   : > { %p2041_p1 = scmp.ne.s32.totalorder %s2563_s26, %s2040_s8  ;;  %p2047_p2 = scmp.lt.u32.totalorder %s2045_s14, %s2040_s8 }
  0x8a   : > { %p2049_p4 = scmp.lt.u32.totalorder %s2040_s8, %s2563_s26 }
  0x8b   : > { %p2043_p12 = pnand %p2574_p11, %p2041_p1  ;;  %p2048_p9 = por %p2047_p2, %p2046_p0 }
  0x8d   : > { %p2044_p13 = pneg %p2043_p12  ;;  %p2050_p10 = por %p2049_p4, %p2048_p9 }
  0x8f   : > { %p2051_p7 = pnand %p2050_p10, %p2044_p13 }
  0x91   : > { %2054 = shalt.err (!%p2051_p7)
}
  0x92   : > { %s2055_s22 = scalar_lea.vmem %s2566_s13, 128  ;;  %s2305_s5 = smov [#allocation5]  }
  0x93   : > { %p2056_p1 = scmp.ne.s32.totalorder %s2566_s13, %s2055_s22  ;;  %s2060_s27 = sshll.u32 %s2305_s5, 4  ;;  %s2061_s27 = int_to_ptr.vmem [resolvable:$false] %s2060_s27 }
  0x94   : > { %s2062_s28 = scalar_lea.vmem %s2061_s27, 256  ;;  %p2063_p6 = scmp.lt.s32.totalorder %s2566_s13, %s2061_s27 }
  0x95   : > { %p2058_p12 = pnand %p2056_p1, %p2574_p11  ;;  %p2064_p8 = scmp.lt.s32.totalorder %s2062_s28, %s2055_s22 }
  0x97   : > { %p2059_p5 = pneg %p2058_p12  ;;  %p2065_p0 = por %p2064_p8, %p2063_p6 }
  0x99   : > { %p2066_p2 = pnand %p2065_p0, %p2059_p5 }
  0x9b   : > { %2069 = shalt.err (!%p2066_p2)
}
  0x9c   : > { %s2946_s8 = smov 4   ;;  %s2947_s14 = smov 64  }
  0x9d   : > { %1878 = dma.hbm_to_vmem [thread:$0]  (!%p2554_p3), %s2563_s26, 128, %s2566_s13, %s2568_s3, %s2947_s14, %s2947_s14, %s2946_s8  }
  0x9e   : > { %s2306_s4 = smov [#allocation10]   ;;  %s2307_s5 = smov [#allocation13]  }
  0x9f   : > { %s416_s1 = sshll.u32 %s2306_s4, 4  ;;  %s443_s16 = sshll.u32 %s2307_s5, 4  ;;  %s417_s1 = int_to_ptr.vmem [resolvable:$true] %s416_s1  ;;  %s444_s16 = int_to_ptr.vmem [resolvable:$true] %s443_s16 }
  0xa0   : > { %s2948_s7 = sld [smem:[#allocation36_spill]]  ;;  %p2949_p8 = scmp.ne.s32.totalorder %s2932_s21, 0 }
  0xa6   : > { %s2070_s28 = scalar_lea.hbm %s2948_s7, 256 }
  0xa7   : > { %p2071_p6 = scmp.ne.s32.totalorder %s2948_s7, %s2070_s28  ;;  %p2077_p10 = scmp.lt.u32.totalorder %s2070_s28, %s2948_s7 }
  0xa9   : > { %p2073_p5 = pnand %p2071_p6, %p2949_p8 }
  0xab   : > { %p2074_p7 = pneg %p2073_p5 }
  0xad   : > { %p2079_p13 = pnand %p2077_p10, %p2074_p7 }
  0xaf   : > { %2082 = shalt.err (!%p2079_p13)
}
  0xb0   : > { %s2083_s26 = scalar_lea.vmem %s417_s1, 256  ;;  %p2091_p12 = scmp.lt.s32.totalorder %s417_s1, %s417_s1 }
  0xb1   : > { %p2084_p9 = scmp.ne.s32.totalorder %s417_s1, %s2083_s26  ;;  %p2092_p0 = scmp.lt.s32.totalorder %s2083_s26, %s2083_s26 }
  0xb3   : > { %p2086_p4 = pnand %p2084_p9, %p2949_p8  ;;  %p2093_p2 = por %p2092_p0, %p2091_p12 }
  0xb5   : > { %p2087_p1 = pneg %p2086_p4 }
  0xb7   : > { %p2094_p3 = pnand %p2093_p2, %p2087_p1 }
  0xb9   : > { %2097 = shalt.err (!%p2094_p3)
}
  0xba   : > { %p2950_p6 = scmp.ne.s32.totalorder %s2930_s23, 0  ;;  %s2098_s6 = scalar_lea.hbm %s2877_s10, 256 }
  0xbb   : > { %p2099_p5 = scmp.ne.s32.totalorder %s2877_s10, %s2098_s6  ;;  %p2105_p10 = scmp.lt.u32.totalorder %s2098_s6, %s2877_s10 }
  0xbc   : > { %1859 = dma.hbm_to_vmem [thread:$0]  (!%p2950_p6), %s2948_s7, 256, %s417_s1, [#allocation9], %s2947_s14, %s2947_s14, %s2946_s8  }
  0xbd   : > { %p2101_p3 = pnand %p2099_p5, %p2949_p8 }
  0xbf   : > { %p2102_p7 = pneg %p2101_p3 }
  0xc1   : > { %p2107_p13 = pnand %p2105_p10, %p2102_p7 }
  0xc3   : > { %2110 = shalt.err (!%p2107_p13)
}
  0xc4   : > { %s2111_s28 = scalar_lea.vmem %s444_s16, 256  ;;  %p2119_p12 = scmp.lt.s32.totalorder %s444_s16, %s444_s16 }
  0xc5   : > { %p2112_p9 = scmp.ne.s32.totalorder %s444_s16, %s2111_s28  ;;  %p2120_p0 = scmp.lt.s32.totalorder %s2111_s28, %s2111_s28 }
  0xc7   : > { %p2114_p4 = pnand %p2112_p9, %p2949_p8  ;;  %p2121_p2 = por %p2120_p0, %p2119_p12 }
  0xc9   : > { %p2115_p1 = pneg %p2114_p4 }
  0xcb   : > { %p2122_p11 = pnand %p2121_p2, %p2115_p1 }
  0xcd   : > { %2125 = shalt.err (!%p2122_p11)
}
  0xce   : > { %s2951_s1 = smov 8   ;;  %s2952_s26 = smov 128  }
  0xcf   : > { %1865 = dma.hbm_to_vmem [thread:$0]  (!%p2950_p6), %s2877_s10, 256, %s444_s16, [#allocation12], %s2952_s26, %s2952_s26, %s2951_s1  }
  0xd0   : > { %s2308_s13 = smov [#allocation16]   ;;  %s2126_s5 = scalar_lea.hbm %s2879_s12, 256 }
  0xd1   : > { %s469_s18 = sshll.u32 %s2308_s13, 4  ;;  %p2127_p11 = scmp.ne.s32.totalorder %s2879_s12, %s2126_s5  ;;  %s470_s18 = int_to_ptr.vmem [resolvable:$true] %s469_s18 }
  0xd2   : > { %p2133_p7 = scmp.lt.u32.totalorder %s2126_s5, %s2879_s12 }
  0xd3   : > { %p2129_p5 = pnand %p2127_p11, %p2949_p8 }
  0xd5   : > { %p2130_p3 = pneg %p2129_p5 }
  0xd7   : > { %p2135_p10 = pnand %p2133_p7, %p2130_p3 }
  0xd9   : > { %2138 = shalt.err (!%p2135_p10)
}
  0xda   : > { %s2139_s16 = scalar_lea.vmem %s470_s18, 256  ;;  %p2147_p1 = scmp.lt.s32.totalorder %s470_s18, %s470_s18 }
  0xdb   : > { %p2140_p13 = scmp.ne.s32.totalorder %s470_s18, %s2139_s16  ;;  %p2148_p12 = scmp.lt.s32.totalorder %s2139_s16, %s2139_s16 }
  0xdd   : > { %p2142_p9 = pnand %p2140_p13, %p2949_p8  ;;  %p2149_p0 = por %p2148_p12, %p2147_p1 }
  0xdf   : > { %p2143_p4 = pneg %p2142_p9 }
  0xe1   : > { %p2150_p2 = pnand %p2149_p0, %p2143_p4 }
  0xe3   : > { %2153 = shalt.err (!%p2150_p2)
}
  0xe4   : > { %1871 = dma.hbm_to_vmem [thread:$0]  (!%p2950_p6), %s2879_s12, 256, %s470_s18, [#allocation15], %s2952_s26, %s2952_s26, %s2951_s1  }
  0xe5   : > { %s2668_s13 = scalar_lea.hbm %s2867_s0, %s2552_s17  ;;  %s487_s23 = scalar_lea.vmem [#allocation2], %s2549_s9 }
  0xe6   : > { %s494_s6 = sshll.u32 %s487_s23, 4  ;;  %s2953_s4 = sand.u32 1, %s2292_s15   ;;  %s2671_s6 = int_to_ptr.vmem [resolvable:$true] %s494_s6 }
  0xe7   : > { %s2675_s5 = scalar_lea.sflag [#allocation3], %s2953_s4  ;;  %s2154_s27 = scalar_lea.hbm %s2668_s13, 128 }
  0xe8   : > { %p2155_p8 = scmp.ne.s32.totalorder %s2668_s13, %s2154_s27  ;;  %p2954_p11 = scmp.ne.s32.totalorder %s2945_s11, 0 }
  0xe9   : > { %s2159_s18 = scalar_lea.hbm %s2867_s0, 256  ;;  %p2160_p3 = scmp.lt.u32.totalorder %s2668_s13, %s2867_s0 }
  0xea   : > { %p2157_p6 = pnand %p2155_p8, %p2954_p11  ;;  %p2161_p7 = scmp.lt.u32.totalorder %s2159_s18, %s2154_s27 }
  0xeb   : > { %p2163_p13 = scmp.lt.u32.totalorder %s2154_s27, %s2668_s13 }
  0xec   : > { %p2158_p5 = pneg %p2157_p6  ;;  %p2162_p10 = por %p2161_p7, %p2160_p3 }
  0xee   : > { %p2164_p9 = por %p2163_p13, %p2162_p10 }
  0xf0   : > { %p2165_p4 = pnand %p2164_p9, %p2158_p5 }
  0xf2   : > { %2168 = shalt.err (!%p2165_p4)
}
  0xf3   : > { %s2169_s16 = scalar_lea.vmem %s2671_s6, 128  ;;  %s2309_s7 = smov [#allocation2]  }
  0xf4   : > { %p2170_p1 = scmp.ne.s32.totalorder %s2671_s6, %s2169_s16  ;;  %s2174_s29 = sshll.u32 %s2309_s7, 4  ;;  %s2175_s29 = int_to_ptr.vmem [resolvable:$false] %s2174_s29 }
  0xf5   : > { %s2176_s21 = scalar_lea.vmem %s2175_s29, 256  ;;  %p2177_p2 = scmp.lt.s32.totalorder %s2671_s6, %s2175_s29 }
  0xf6   : > { %p2172_p12 = pnand %p2170_p1, %p2954_p11  ;;  %p2178_p8 = scmp.lt.s32.totalorder %s2176_s21, %s2169_s16 }
  0xf8   : > { %p2173_p0 = pneg %p2172_p12  ;;  %p2179_p6 = por %p2178_p8, %p2177_p2 }
  0xfa   : > { %p2180_p3 = pnand %p2179_p6, %p2173_p0 }
  0xfc   : > { %2183 = shalt.err (!%p2180_p3)
}
  0xfd   : > { %p2955_p5 = scmp.ne.s32.totalorder %s2943_s24, 0  ;;  %s2706_s4 = scalar_lea.hbm %s2869_s2, %s2552_s17 }
  0xfe   : > { %s529_s27 = scalar_lea.vmem [#allocation7], %s2549_s9  ;;  %s2184_s26 = scalar_lea.hbm %s2706_s4, 128 }
  0xff   : > { %1875 = dma.hbm_to_vmem [thread:$0]  (!%p2955_p5), %s2668_s13, 128, %s2671_s6, %s2675_s5, %s2947_s14, %s2947_s14, %s2946_s8  }
 0x100   : > { %s536_s1 = sshll.u32 %s529_s27, 4  ;;  %p2185_p7 = scmp.ne.s32.totalorder %s2706_s4, %s2184_s26  ;;  %s2709_s1 = int_to_ptr.vmem [resolvable:$true] %s536_s1 }
 0x101   : > { %s2189_s6 = scalar_lea.hbm %s2869_s2, 256  ;;  %p2190_p9 = scmp.lt.u32.totalorder %s2706_s4, %s2869_s2 }
 0x102   : > { %p2187_p10 = pnand %p2185_p7, %p2954_p11  ;;  %p2191_p4 = scmp.lt.u32.totalorder %s2189_s6, %s2184_s26 }
 0x103   : > { %p2193_p12 = scmp.lt.u32.totalorder %s2184_s26, %s2706_s4 }
 0x104   : > { %p2188_p13 = pneg %p2187_p10  ;;  %p2192_p1 = por %p2191_p4, %p2190_p9 }
 0x106   : > { %p2194_p0 = por %p2193_p12, %p2192_p1 }
 0x108   : > { %p2195_p2 = pnand %p2194_p0, %p2188_p13 }
 0x10a   : > { %2198 = shalt.err (!%p2195_p2)
}
 0x10b   : > { %s2199_s9 = scalar_lea.vmem %s2709_s1, 128  ;;  %s2310_s22 = smov [#allocation7]  }
 0x10c   : > { %p2200_p8 = scmp.ne.s32.totalorder %s2709_s1, %s2199_s9  ;;  %s2204_s28 = sshll.u32 %s2310_s22, 4  ;;  %s2205_s28 = int_to_ptr.vmem [resolvable:$false] %s2204_s28 }
 0x10d   : > { %s2206_s16 = scalar_lea.vmem %s2205_s28, 256  ;;  %p2207_p7 = scmp.lt.s32.totalorder %s2709_s1, %s2205_s28 }
 0x10e   : > { %p2202_p6 = pnand %p2200_p8, %p2954_p11  ;;  %p2208_p10 = scmp.lt.s32.totalorder %s2206_s16, %s2199_s9 }
 0x110   : > { %p2203_p3 = pneg %p2202_p6  ;;  %p2209_p9 = por %p2208_p10, %p2207_p7 }
 0x112   : > { %p2210_p4 = pnand %p2209_p9, %p2203_p3 }
 0x114   : > { %2213 = shalt.err (!%p2210_p4)
}
 0x115   : > { %1881 = dma.hbm_to_vmem [thread:$0]  (!%p2955_p5), %s2706_s4, 128, %s2709_s1, %s2568_s3, %s2947_s14, %s2947_s14, %s2946_s8  }
 0x116   : > { %p2956_p11 = scmp.ne.s32.totalorder %s2929_s20, 0 }
 0x117   : > { %s2739_s11 = sand.u32 (!%p2956_p11), 1, %s2288_s30   ;;  %p2957_p13 = scmp.ne.s32.totalorder (!%p2956_p11), %s2938_s25, 0 }
 0x118   : > { %548 = sbr.rel (%p2956_p11) target bundleno = 1145 (0x479), region = 72  ;;  %s2742_s7 = sshll.u32 (!%p2956_p11), %s2739_s11, 3 }
 0x119   : > { %s551_s24 = scalar_lea.sflag (!%p2956_p11), [#allocation3], %s2739_s11  ;;  %s554_s29 = scalar_lea.vmem (!%p2956_p11), [#allocation2], %s2742_s7 }
 0x11f   : > { %2259 = dma.done.wait (%p2957_p13), %s551_s24, 128  }
 0x120   : > { %2261 = vsyncadd (%p2957_p13), %s551_s24, 4294967168  ;;  %s2958_s3 = sld [smem:[#allocation26_spill]]  ;;  %s563_s14 = scalar_lea.vmem [#allocation5], %s2742_s7 }
 0x126   : > { %s559_s20 = sand.u32 1, %s2958_s3  }
 0x127   : > { %s560_s8 = scalar_lea.sflag [#allocation6], %s559_s20 }
 0x128   : > { %2263 = dma.done.wait (%p2957_p13), %s560_s8, 256  }
 0x129   : > { %2265 = vsyncadd (%p2957_p13), %s560_s8, 4294967040  ;;  %s572_s21 = scalar_lea.vmem [#allocation7], %s2742_s7  ;;  %p2959_p5 = scmp.eq.s32.totalorder %s2958_s3, 0 }
 0x12b   : > { %2267 = dma.done.wait (%p2959_p5), [#allocation9], 512   ;;  %p2960_p1 = pmov %p2959_p5 }
 0x12d   : > { %2269 = vsyncadd (%p2960_p1), [#allocation9], 4294966784  ;;  %p2961_p12 = pmov %p2960_p1 }
 0x12e   : > { %p2962_p0 = pmov %p2960_p1 }
 0x12f   : > { %2271 = dma.done.wait (%p2961_p12), [#allocation12], 272  }
 0x130   : > { %2273 = vsyncadd (%p2962_p0), [#allocation12], 4294967024  ;;  %p2963_p2 = pmov %p2962_p0 }
 0x131   : > { %p2964_p8 = pmov %p2962_p0 }
 0x132   : > { %2275 = dma.done.wait (%p2963_p2), [#allocation15], 512  }
 0x133   : > { %2277 = vsyncadd (%p2964_p8), [#allocation15], 4294966784  ;;  %v2311_v0 = vmov 0.0   ;;  %vm2312_vm0 = vmmov 0   ;;  %v1947_v1 = vld [vmem:[#allocation8] sm:$0xff]   ;;  %v1948_v2 = vld [vmem:[#allocation8 + $0x8] sm:$0xff]  }
 0x134   : > { %1725 = vmatprep.subr.bf16.mxu0 %v2311_v0  ;;  %1733 = vmatprep.subr.bf16.mxu1 %v2311_v0  ;;  %s2965_s23 = sld [smem:[#allocation34_spill]]  ;;  %v1950_v5 = vld [vmem:[%s554_s29] sm:$0xff]   ;;  %vm692_vm1 = vcmask 261120   ;;  %v1952_v6 = vld [vmem:[%s563_s14] sm:$0xff]   ;;  %s2966_s18 = sld [smem:[#allocation38_spill]]  ;;  %vm889_vm2 = vcmask 130048  }
 0x135   : > { %1729 = vmatprep.mubr.msk.bf16.mxu0 %vm2312_vm0, %v2311_v0  ;;  %1737 = vmatprep.mubr.msk.bf16.mxu1 %vm2312_vm0, %v2311_v0  ;;  %s2967_s5 = sld [smem:[#allocation33_spill]]  ;;  %s2968_s22 = sld [smem:[#allocation35_spill]]  ;;  %v971_v25 = vld [vmem:[#allocation13] sm:$0xff]  ;;  %v972_v26 = vld [vmem:[#allocation13 + $0x8] sm:$0x1]  ;;  %v1953_v27 = vld [vmem:[#allocation10] sm:$0xff]  }
 0x136   : > { %1726 = vmatpush3.bf16.msra.mxu0 %v1947_v1  ;;  %v1954_v28 = vld [vmem:[#allocation10 + $0x8] sm:$0xff]   ;;  %v1218_v30 = vld [vmem:[#allocation16] sm:$0xff]  ;;  %vm1220_vm3 = vcmask 72704   ;;  %vm1227_vm4 = vcmask 1040384   ;;  %vm2313_vm5 = vmmov 1   ;;  %v1219_v53 = vld [vmem:[#allocation16 + $0x8] sm:$0xff] }
 0x137   : > { %1727 = vmatprep.subr.bf16.mxu0 %v2311_v0  ;;  %v1955_v29 = vld [vmem:[%s572_s21] sm:$0xff]   ;;  %vm1808_vm6 = vmpackc.low %vm1227_vm4, %vm2313_vm5  ;;  %s1650_s7 = sshll.u32 %s2739_s11, 4  ;;  %v1663_v56 = vld [vmem:[#allocation11] ss:$0 sm:$0xff]  ;;  %s2969_s29 = sld [smem:[#allocation29_spill]] }
 0x138   : > { %v1216_v54 = vld [vmem:[#allocation14] sm:$0xff]  ;;  %v1217_v55 = vld [vmem:[#allocation14 + $0x8] sm:$0xff]  ;;  %s648_s24 = scalar_lea.vmem [#allocation17], %s1650_s7  ;;  %s1691_s8 = sshll.u32 %s2958_s3, 8 }
 0x139   : > { %s1421_s20 = sshll.u32 %s648_s24, 4  ;;  %s2970_s25 = sld [smem:[#allocation40_spill]]  ;;  %s2812_s20 = int_to_ptr.vmem [resolvable:$true] %s1421_s20 }
 0x13a   : > { %v1949_v3 = vld [vmem:[%s2965_s23] sm:$0xff]   ;;  %v1951_v4 = vld [vmem:[%s2965_s23 + $0x8] sm:$0xff]   ;;  %1728 = vmatpush3.bf16.msra.mxu0 %v1948_v2  ;;  %s1403_s4 = scalar_lea.sflag [#allocation4], %s2739_s11  ;;  %s2214_s27 = scalar_lea.vmem %s2812_s20, 256 }
 0x13b   : > { %1734 = vmatpush3.bf16.msra.mxu1 %v1949_v3  ;;  %1741 = vmatprep.subr.bf16.mxu0 %v2311_v0  ;;  %v887_v7 = vld [vmem:[%s2966_s18] sm:$0xff]  ;;  %v888_v24 = vld [vmem:[%s2966_s18 + $0x8] sm:$0x1]  ;;  %p2215_p6 = scmp.ne.s32.totalorder %s2812_s20, %s2214_s27  ;;  %s2314_s1 = smov [#allocation17]  }
 0x13c   : > { %1735 = vmatprep.subr.bf16.mxu1 %v2311_v0  ;;  %v1653_v8 = vld [vmem:[%s2967_s5] ss:$0 sm:$0xff]  ;;  %s2218_s26 = sshll.u32 %s2314_s1, 4  ;;  %s2219_s26 = int_to_ptr.vmem [resolvable:$false] %s2218_s26 }
 0x13d   : > { %1730 = vmatmul.mubr.msk.bf16.vlgmr.msra.gmra.mrb[0].mxu0 %vm692_vm1, %v1950_v5  ;;  %v1658_v10 = vld [vmem:[%s2968_s22] ss:$0 sm:$0xff]  ;;  %p2971_p3 = scmp.ne.s32.totalorder %s2969_s29, 0  ;;  %s2220_s13 = scalar_lea.vmem %s2219_s26, 512 }
 0x13e   : > { %1745 = vmatprep.mubr.msk.bf16.mxu0 %vm2312_vm0, %v2311_v0  ;;  %1742 = vmatpush3.bf16.msra.mxu0 %v1953_v27  ;;  %p2221_p9 = scmp.lt.s32.totalorder %s2812_s20, %s2219_s26  ;;  %p2222_p4 = scmp.lt.s32.totalorder %s2220_s13, %s2214_s27 }
 0x13f   : > { %1736 = vmatpush3.bf16.msra.mxu1 %v1951_v4  ;;  %1743 = vmatprep.subr.bf16.mxu0 %v2311_v0  ;;  %s2818_s19 = scalar_lea.hbm %s2970_s25, %s1691_s8  ;;  %p2216_p7 = pnand %p2215_p6, %p2971_p3 }
 0x140   : > { %p2223_p11 = por %p2222_p4, %p2221_p9 }
 0x141   : > { %p2217_p10 = pneg %p2216_p7 }
 0x142   : > { %1738 = vmatmul.mubr.msk.bf16.vlgmr.msra.gmra.mrb[0].mxu1 %vm692_vm1, %v1952_v6  ;;  %1744 = vmatpush3.bf16.msra.mxu0 %v1954_v28 }
 0x143   : > { %1753 = vmatprep.mubr.msk.f32.mxu1 %vm889_vm2, %v887_v7  ;;  %p2224_p13 = pnand %p2223_p11, %p2217_p10 }
 0x145   : > { %1746 = vmatmul.mubr.msk.bf16.vlgmr.msra.gmra.mrb[4].mxu0 %vm692_vm1, %v1955_v29 }
 0x146   : > { %1781 = vmatprep.mubr.msk.f32.mxu0 %vm1220_vm3, %v1218_v30 }
 0x210   : > { %v730_v9 = vpop.f32.mrb[0].mxu0 }
 0x211   : > { %v1731_v11 = vpop.f32.mrb[1].mxu0  ;;  %v731_v14 = vadd.f32 %v1653_v8, %v730_v9 }
 0x212   : > { %v733_v12 = vpop.f32.mrb[2].mxu0 }
 0x213   : > { %v734_v15 = vadd.f32 %v1653_v8, %v733_v12  ;;  %v1732_v16 = vpop.f32.mrb[3].mxu0 }
 0x215   : > { %v804_v13 = vpop.f32.mrb[0].mxu1  ;;  %v1791_v20 = vpack.c.bf16 %v734_v15, %v731_v14 }
 0x216   : > { %v805_v17 = vadd.f32 %v1658_v10, %v804_v13  ;;  %v1739_v18 = vpop.f32.mrb[1].mxu1 }
 0x217   : > { %v807_v19 = vpop.f32.mrb[2].mxu1  ;;  %1792 = vmatprep.subr.bf16.mxu1 %v1791_v20 }
 0x218   : > { %v808_v21 = vadd.f32 %v1658_v10, %v807_v19  ;;  %v1740_v22 = vpop.f32.mrb[3].mxu1  ;;  %1794 = vmatpush3.bf16.msra.mxu1 %v1791_v20  ;;  %v878_v57 = vpop.f32.mrb[4].mxu0 }
 0x219   : > { %1796 = vmatprep.subr.bf16.mxu1 %v1791_v20  ;;  %v879_v58 = vadd.f32 %v1663_v56, %v878_v57  ;;  %v1747_v59 = vpop.f32.mrb[5].mxu0 }
 0x21a   : > { %v1799_v23 = vpack.c.bf16 %v808_v21, %v805_v17  ;;  %v881_v60 = vpop.f32.mrb[6].mxu0 }
 0x21b   : > { %1754 = vmatmul.mubr.msk.f32.vlgmr.msra.gmra.mrb[4].mxu1 %vm889_vm2, %v888_v24  ;;  %885 = vst.msk [vmem:[%s648_s24] sm:$0xff] %vm692_vm1, %v879_v58  ;;  %v882_v61 = vadd.f32 %v1663_v56, %v881_v60  ;;  %v1748_v62 = vpop.f32.mrb[7].mxu0 }
 0x21c   : > { %1798 = vmatpush3.bf16.msra.mxu1 %v1791_v20  ;;  %1760 = vmatprep.mubr.msk.f32.mxu1 %vm889_vm2, %v971_v25 }
 0x21d   : > { %1800 = vmatprep.subr.bf16.mxu1 %v1799_v23  ;;  %886 = vst.msk [vmem:[%s648_s24 + $0x8] sm:$0xff] %vm692_vm1, %v882_v61 }
 0x21f   : > { %1761 = vmatmul.mubr.msk.f32.vlgmr.msra.gmra.mrb[6].mxu1 %vm889_vm2, %v972_v26 }
 0x220   : > { %1802 = vmatpush3.bf16.msra.mxu1 %v1799_v23  ;;  %1767 = vmatprep.mubr.msk.f32.mxu1 %vm889_vm2, %v887_v7 }
 0x221   : > { %1804 = vmatprep.subr.bf16.mxu1 %v1799_v23 }
 0x223   : > { %1768 = vmatmul.mubr.msk.f32.vlgmr.msra.gmra.mrb[8].mxu1 %vm889_vm2, %v888_v24 }
 0x224   : > { %1806 = vmatpush3.bf16.msra.mxu1 %v1799_v23  ;;  %1774 = vmatprep.mubr.msk.f32.mxu1 %vm889_vm2, %v971_v25 }
 0x227   : > { %1775 = vmatmul.mubr.msk.f32.vlgmr.msra.gmra.mrb[10].mxu1 %vm889_vm2, %v972_v26 }
 0x2ee   : > { %v1755_v31 = vpop.f32.mrb[4].mxu1 }
 0x2ef   : > { %v962_v32 = vpop.f32.mrb[5].mxu1 }
 0x2f2   : > { %v1762_v33 = vpop.f32.mrb[6].mxu1 }
 0x2f3   : > { %v1045_v34 = vpop.f32.mrb[7].mxu1 }
 0x2f6   : > { %v1769_v35 = vpop.f32.mrb[8].mxu1 }
 0x2f7   : > { %v1205_v36 = vmul.f32 %v1769_v35, %v1755_v31  ;;  %v1211_v37 = vmul.f32 %v1769_v35, %v1762_v33  ;;  %v1120_v38 = vpop.f32.mrb[9].mxu1 }
 0x2f8   : > { %v1204_v39 = vmul.f32 %v1120_v38, %v962_v32  ;;  %v1210_v40 = vmul.f32 %v1120_v38, %v1045_v34 }
 0x2fa   : > { %v1776_v41 = vpop.f32.mrb[10].mxu1 }
 0x2fb   : > { %v1207_v42 = vmul.f32 %v1776_v41, %v1762_v33  ;;  %v1213_v43 = vmul.f32 %v1776_v41, %v1755_v31  ;;  %v1195_v44 = vpop.f32.mrb[11].mxu1 }
 0x2fc   : > { %v1206_v45 = vmul.f32 %v1195_v44, %v1045_v34  ;;  %v1212_v46 = vmul.f32 %v1195_v44, %v962_v32 }
 0x2fd   : > { %v1209_v47 = vadd.f32 %v1207_v42, %v1205_v36  ;;  %v1215_v48 = vsub.f32 %v1211_v37, %v1213_v43 }
 0x2fe   : > { %v1208_v49 = vadd.f32 %v1206_v45, %v1204_v39  ;;  %v1214_v50 = vsub.f32 %v1210_v40, %v1212_v46 }
 0x300   : > { %v1807_v51 = vpack.c.bf16 %v1215_v48, %v1214_v50  ;;  %v1813_v52 = vpack.c.bf16 %v1209_v47, %v1208_v49 }
 0x302   : > { %1809 = vmatprep.subr.msk.bf16.mxu0 %vm1808_vm6, %v1807_v51 }
 0x303   : > { %1812 = vmatpush3.bf16.msk.msra.mxu0 %vm1808_vm6, %v1807_v51 }
 0x304   : > { %1815 = vmatprep.subr.msk.bf16.mxu0 %vm1808_vm6, %v1813_v52 }
 0x306   : > { %1782 = vmatmul.mubr.msk.f32.vlgmr.msra.gmra.mrb[8].mxu0 %vm1220_vm3, %v1219_v53 }
 0x307   : > { %1818 = vmatpush3.bf16.msk.msra.mxu0 %vm1808_vm6, %v1813_v52  ;;  %1788 = vmatprep.mubr.msk.f32.mxu0 %vm1220_vm3, %v1216_v54 }
 0x30e   : > { %1789 = vmatmul.mubr.msk.f32.vlgmr.msra.gmra.mrb[8].mxu0 %vm1220_vm3, %v1217_v55 }
 0x3e1   : > { %v1790_v63 = vpop.f32.mrb[8].mxu0 }
 0x3e2   : > { %v1381_v0 = vpop.f32.mrb[9].mxu0  ;;  %v1393_v2 = vsel %vm692_vm1, %v1790_v63, 0.0 }
 0x3e3   : > { %v1390_v1 = vsel %vm692_vm1, %v1381_v0, 0.0 }
 0x3e4   : > { %1391 = vadd.xlane.f32.xlu0 %v1390_v1 }
 0x3e8   : > { %1394 = vadd.xlane.f32.xlu0 %v1393_v2 }
 0x3e9   : > { %2227 = shalt.err (!%p2224_p13)
}
 0x3ea   : > { %s2228_s6 = scalar_lea.hbm %s2818_s19, 256  ;;  %s2232_s9 = scalar_lea.hbm %s2970_s25, 512 }
 0x3eb   : > { %p2229_p5 = scmp.ne.s32.totalorder %s2818_s19, %s2228_s6  ;;  %p2233_p0 = scmp.lt.u32.totalorder %s2818_s19, %s2970_s25 }
 0x3ec   : > { %p2234_p2 = scmp.lt.u32.totalorder %s2232_s9, %s2228_s6  ;;  %p2236_p6 = scmp.lt.u32.totalorder %s2228_s6, %s2818_s19 }
 0x3ed   : > { %p2230_p1 = pnand %p2229_p5, %p2971_p3 }
 0x3ee   : > { %p2235_p8 = por %p2234_p2, %p2233_p0 }
 0x3ef   : > { %p2231_p12 = pneg %p2230_p1 }
 0x3f0   : > { %p2237_p7 = por %p2236_p6, %p2235_p8 }
 0x3f2   : > { %p2238_p10 = pnand %p2237_p7, %p2231_p12 }
 0x3f4   : > { %2241 = shalt.err (!%p2238_p10)
}
 0x3f5   : > { %s2315_s16 = smov 128   ;;  %s2316_s7 = smov 8   ;;  %vm1399_vm7 = vcmask 7168  }
 0x3f6   : > { %1851 = dma.vmem_to_hbm [thread:$0]  (%p2971_p3), %s2812_s20, 256, %s2818_s19, %s1403_s4, %s2315_s16, %s2315_s16, %s2316_s7  }
 0x3f7   : > { %p656_p9 = scmp.lt.s32.totalorder %s2958_s3, 1  ;;  %s2972_s21 = sld [smem:[#allocation41_spill]] }
 0x3f9   : > { %s2984_s3 = smov (!%p656_p9, %s2958_s3), 1 }
 0x3fa   : > { %s1690_s24 = sshll.u32 %s2984_s3, 4 }
 0x3fd   : > { %s660_s27 = scalar_lea.vmem %s2972_s21, %s1690_s24 }
 0x471   : > { %v1392_v3 = vpop.xlane.xlu0 %1391 }
 0x472   : > { %v1397_v4 = vmul.f32 0.03125, %v1392_v3 }
 0x474   : > { %1400 = vst.msk [vmem:[%s660_s27] sm:$0xff] %vm1399_vm7, %v1397_v4 }
 0x475   : > { %v1395_v5 = vpop.xlane.xlu0 %1394 }
 0x476   : > { %v1398_v6 = vmul.f32 0.03125, %v1395_v5 }
 0x478   : > { %1401 = vst.msk [vmem:[%s660_s27 + $0x8] sm:$0xff] %vm1399_vm7, %v1398_v6 }
 0x479 PF: > { %s2973_s1 = sld [smem:[#allocation24_spill]]  ;;  %s2974_s26 = sld [smem:[#allocation30_spill]] }
 0x47a   : > { %s2975_s29 = sld [smem:[#allocation25_spill]] }
 0x47f   : > { %s1439_s11 = sand.u32 1, %s2973_s1   ;;  %p2976_p3 = scmp.ne.s32.totalorder %s2974_s26, 0 }
 0x480   : > { %p2977_p4 = scmp.ge.s32.totalorder %s2975_s29, 2  ;;  %s1440_s3 = scalar_lea.sflag [#allocation4], %s1439_s11 }
 0x482   : > { %p1883_p11 = pnand %p2977_p4, %p2976_p3 }
 0x484   : > { %2279 = dma.done.wait (!%p1883_p11), %s1440_s3, 256  }
 0x485   : > { %2281 = vsyncadd (!%p1883_p11), %s1440_s3, 4294967040  ;;  %s2978_s16 = sld [smem:[#allocation27_spill]]  ;;  %s2979_s20 = sld [smem:[#allocation28_spill]] }
 0x486   : > { %s2980_s29 = smov %s2288_s30  ;;  %s2981_s30 = smov %s2292_s15 }
 0x48b   : > { %p34_p13 = scmp.ge.s32.totalorder %s2978_s16, 4   ;;  %s2982_s15 = smov %s2979_s20 }
 0x48d   :  { %36 = sbr.rel (!%p34_p13) target bundleno = 22 (0x16), region = 177 }
 0x494   :  { %1453 = vsyncpa [#allocation3], 1 }
 0x495   :  { %1455 = vsyncpa [#allocation3 + $0x1], 1 }
 0x496   :  { %1456 = vsyncpa [#allocation6], 1 }
 0x497   :  { %1458 = vsyncpa [#allocation6 + $0x1], 1 }
 0x498   :  { %1459 = vsyncpa [#allocation9], 1 }
 0x499   :  { %1460 = vsyncpa [#allocation12], 1 }
 0x49a   :  { %1461 = vsyncpa [#allocation15], 1 }
 0x49b   :  { %1462 = vsyncpa [#allocation4], 1 }
 0x49c   :  { %1464 = vsyncpa [#allocation4 + $0x1], 1 }

</bundles_post_ra>
